<compile_context>
chip_gen: v6e
topology: v6e:2x2x1
jax: 0.10.0
libtpu: 0.0.40
codegen_flags: <defaults>
</compile_context>

<pallas_src>
import jax
import jax.numpy as jnp
from jax.experimental import pallas as pl
from jax.experimental.pallas import tpu as pltpu


def _round_up(v: int, m: int) -> int:
    return (v + m - 1) // m * m


def _tpu_vmem_capacity_bytes() -> int:
    """Physical VMEM per core; falls back to the v7x-safe 64 MiB."""
    try:
        return int(pltpu.get_tpu_info().vmem_capacity_bytes)
    except Exception:
        return 64 << 20


# ----------------------------- Pallas kernels ---------------------------------
def gcn_layer1_kernel(adj_ref, z1_ref, b1_ref, w2_ref, p_ref):
    """P_tile = relu(Â_tile @ (X @ W1) + b1) @ W2  (project-before-aggregate)."""
    h = jnp.dot(adj_ref[...], z1_ref[...], preferred_element_type=jnp.float32)
    h = jnp.maximum(h + b1_ref[...], 0.0)
    # Project to (lane-padded) num_classes right away: classes << hidden, so
    # only this small P ever leaves VMEM and layer 2 aggregates a 128-lane slab.
    p_ref[...] = jnp.dot(h.astype(w2_ref.dtype), w2_ref[...],
                         preferred_element_type=jnp.float32).astype(p_ref.dtype)


def gcn_layer2_kernel(adj_ref, p_ref, b2_ref, out_ref):
    """out_tile = Â_tile @ P + b2."""
    out_ref[...] = (jnp.dot(adj_ref[...], p_ref[...],
                            preferred_element_type=jnp.float32)
                    + b2_ref[...]).astype(out_ref.dtype)


# ------------------------------ kernel wrapper --------------------------------
def _gcn_pallas(adj_p, z1_p, b1_p, w2_p, b2_p, *, tm, vmem_cap):
    """out = Â @ relu(Â @ Z1 + b1) @ W2 + b2, as two row-tiled pallas_calls."""
    n_pad = adj_p.shape[0]
    hpad = z1_p.shape[1]
    cpad = w2_p.shape[1]
    r = n_pad // tm
    f32, bf16 = jnp.float32, jnp.bfloat16

    def limit(footprint):
        return int(min(vmem_cap, max(footprint + (8 << 20), 32 << 20)))

    # TODO(synk): if xprof shows exposed DMA at small tm (v7x), add
    # pipeline_mode=pl.Buffered(3) on the Â panel spec and Buffered(1) on the
    # constant-index operands.

    # --- layer 1: P = relu(Â @ Z1 + b1) @ W2 ----------------------------------
    flops1 = 2 * n_pad * n_pad * hpad + 2 * n_pad * hpad * cpad
    bytes1 = (2 * n_pad * n_pad + 2 * n_pad * hpad + 4 * hpad
              + 2 * hpad * cpad + 2 * n_pad * cpad)
    vmem1 = (2 * tm * n_pad * 2      # double-buffered Â panel (bf16)
             + 2 * n_pad * hpad * 2  # Z1 (resident, bf16)
             + 2 * hpad * 4          # b1 (f32)
             + 2 * hpad * cpad * 2   # W2 (bf16)
             + 2 * tm * cpad * 2)    # P out tile (bf16)
    p = pl.pallas_call(
        gcn_layer1_kernel,
        out_shape=jax.ShapeDtypeStruct((n_pad, cpad), bf16),
        grid_spec=pltpu.PrefetchScalarGridSpec(
            num_scalar_prefetch=0,
            grid=(r,),
            in_specs=[
                pl.BlockSpec((tm, n_pad), lambda i: (i, 0)),    # Â row panel
                pl.BlockSpec((n_pad, hpad), lambda i: (0, 0)),  # Z1 = X @ W1
                pl.BlockSpec((1, hpad), lambda i: (0, 0)),      # b1
                pl.BlockSpec((hpad, cpad), lambda i: (0, 0)),   # W2
            ],
            out_specs=pl.BlockSpec((tm, cpad), lambda i: (i, 0)),
        ),
        compiler_params=pltpu.CompilerParams(
            dimension_semantics=("parallel",),
            vmem_limit_bytes=limit(vmem1),
        ),
        cost_estimate=pl.CostEstimate(flops=flops1, transcendentals=0,
                                      bytes_accessed=bytes1),
    )(adj_p, z1_p, b1_p, w2_p)

    # --- layer 2: out = Â @ P + b2 ---------------------------------------------
    flops2 = 2 * n_pad * n_pad * cpad
    bytes2 = 2 * n_pad * n_pad + 2 * n_pad * cpad + 4 * cpad + 4 * n_pad * cpad
    vmem2 = (2 * tm * n_pad * 2      # double-buffered Â panel (bf16)
             + 2 * n_pad * cpad * 2  # P (resident, bf16)
             + 2 * cpad * 4          # b2 (f32)
             + 2 * tm * cpad * 4)    # out tile (f32)
    out = pl.pallas_call(
        gcn_layer2_kernel,
        out_shape=jax.ShapeDtypeStruct((n_pad, cpad), f32),
        grid_spec=pltpu.PrefetchScalarGridSpec(
            num_scalar_prefetch=0,
            grid=(r,),
            in_specs=[
                pl.BlockSpec((tm, n_pad), lambda i: (i, 0)),    # Â row panel
                pl.BlockSpec((n_pad, cpad), lambda i: (0, 0)),  # P (resident)
                pl.BlockSpec((1, cpad), lambda i: (0, 0)),      # b2
            ],
            out_specs=pl.BlockSpec((tm, cpad), lambda i: (i, 0)),
        ),
        compiler_params=pltpu.CompilerParams(
            dimension_semantics=("parallel",),
            vmem_limit_bytes=limit(vmem2),
        ),
        cost_estimate=pl.CostEstimate(flops=flops2, transcendentals=0,
                                      bytes_accessed=bytes2),
    )(adj_p, p, b2_p)
    return out


# ------------------------------- glue (JAX) -----------------------------------
def normalized_adjacency(edge_index, num_nodes, *, num_nodes_padded=None,
                         dtype=jnp.float32):
    """Â = D^{-1/2}(A + I)D^{-1/2} (PyG GCNConv default normalization).

    Built directly at the (optionally padded) size and target dtype so no
    separate pad/cast pass over the N^2 matrix is needed.  Padded rows/cols
    stay zero (their degree is 0, so D^{-1/2} is forced to 0, not inf).

    Note: .at[].set dedups repeated edges and `+ I` assumes no explicit
    self-loops in edge_index (true for the ring graph below).
    """
    n_tot = int(num_nodes_padded) if num_nodes_padded is not None else int(num_nodes)
    src, dst = edge_index[0], edge_index[1]
    a = jnp.zeros((n_tot, n_tot), jnp.float32).at[src, dst].set(1.0)
    diag = jnp.arange(num_nodes)
    a = a.at[diag, diag].add(1.0)                        # self-loops, real nodes only
    deg = a.sum(axis=1)
    d_inv_sqrt = jnp.where(deg > 0, jax.lax.rsqrt(jnp.maximum(deg, 1e-12)), 0.0)
    return (d_inv_sqrt[:, None] * a * d_inv_sqrt[None, :]).astype(dtype)


def gcn_forward(params, x, edge_index, *, max_row_tile=1024):
    """Matches GCN.forward (eval mode): conv1 -> relu -> dropout(identity) -> conv2."""
    n, _ = x.shape
    hidden = int(params["w1"].shape[1])
    classes = int(params["w2"].shape[1])
    hpad = _round_up(hidden, 128)      # lane-dense feature dims -> unmasked vst
    cpad = _round_up(classes, 128)

    # Row-tile size from the per-generation VMEM budget (7/8 of capacity):
    # double-buffered bf16 Â panel + resident Z1/P/W2/biases + out tiles.
    cap = _tpu_vmem_capacity_bytes()
    budget = (cap * 7) // 8
    n16 = _round_up(n, 16)                        # bf16 sublane packing
    fixed = max(2 * n16 * hpad * 2 + 2 * hpad * 4 + 2 * hpad * cpad * 2,   # call 1
                2 * n16 * cpad * 2 + 2 * cpad * 4)                          # call 2
    per_row = 4 * n16 + 8 * cpad                  # Â panel + worst-case out tile
    tm_cap = max(budget - fixed, per_row) // per_row
    tm = max(16, min(n16, int(max_row_tile), (tm_cap // 16) * 16))
    n_pad = _round_up(n16, tm)

    f32, bf16 = jnp.float32, jnp.bfloat16
    # Â built once, at padded size, in bf16 (it is streamed twice and dominates
    # HBM bytes; f32 accumulation keeps the error small).
    adj_p = normalized_adjacency(edge_index, n, num_nodes_padded=n_pad, dtype=bf16)
    # Fold W1 before aggregation: Z1 = X @ W1 is O(N*F_in*hidden), trivial next
    # to the O(N^2) aggregations, and turns layer 1 into one 128-lane matmul.
    z1 = x.astype(f32) @ params["w1"].astype(f32)
    z1_p = jnp.zeros((n_pad, hpad), bf16).at[:n, :hidden].set(z1.astype(bf16))
    b1_p = jnp.zeros((1, hpad), f32).at[0, :hidden].set(params["b1"].astype(f32))
    w2_p = jnp.zeros((hpad, cpad), bf16).at[:hidden, :classes].set(
        params["w2"].astype(bf16))
    b2_p = jnp.zeros((1, cpad), f32).at[0, :classes].set(params["b2"].astype(f32))

    # TODO(synk): F.dropout is identity in eval mode; training-mode dropout
    # would use pltpu.prng_seed / pltpu.prng_random_bits inside layer 1.
    out_pad = _gcn_pallas(adj_p, z1_p, b1_p, w2_p, b2_p, tm=tm, vmem_cap=cap)
    return out_pad[:n, :classes]


def init_params(key, num_node_features, hidden_dim, num_classes):
    k1, k2, k3, k4 = jax.random.split(key, 4)
    glorot = lambda k, fi, fo: jax.random.normal(k, (fi, fo), jnp.float32) * jnp.sqrt(
        2.0 / (fi + fo)
    )
    return {
        "w1": glorot(k1, num_node_features, hidden_dim),
        "b1": jax.random.normal(k2, (hidden_dim,), jnp.float32) * 0.01,
        "w2": glorot(k3, hidden_dim, num_classes),
        "b2": jax.random.normal(k4, (num_classes,), jnp.float32) * 0.01,
    }


# --------------------------------- main ---------------------------------------
if __name__ == "__main__":
    # NOTE: N=16 is a smoke test only (pure launch/padding overhead); the
    # bf16/tiling choices are sized for and should be benchmarked at N >= 2-8K.
    NUM_NODES = 16
    NUM_NODE_FEATURES = 8
    HIDDEN_DIM = 32
    NUM_CLASSES = 4

    key = jax.random.PRNGKey(0)
    kx, kp = jax.random.split(key)

    # deterministic node features
    x = jax.random.normal(kx, (NUM_NODES, NUM_NODE_FEATURES), jnp.float32)

    # deterministic ring graph, both directions: edge_index shape (2, 2*N)
    idx = jnp.arange(NUM_NODES, dtype=jnp.int32)
    fwd = jnp.stack([idx, (idx + 1) % NUM_NODES])
    bwd = jnp.stack([(idx + 1) % NUM_NODES, idx])
    edge_index = jnp.concatenate([fwd, bwd], axis=1)

    params = init_params(kp, NUM_NODE_FEATURES, HIDDEN_DIM, NUM_CLASSES)

    out = gcn_forward(params, x, edge_index)
    out = jax.block_until_ready(out)
    assert out.shape == (NUM_NODES, NUM_CLASSES), out.shape

    # quick correctness check against plain-JAX f32 reference; tolerance is
    # loosened consciously because Â / activations are streamed in bf16
    # (f32 MXU accumulation keeps the relative error at ~1e-2).
    adj_ref = normalized_adjacency(edge_index, NUM_NODES)
    h_ref = jnp.maximum(adj_ref @ x @ params["w1"] + params["b1"], 0.0)
    ref = adj_ref @ h_ref @ params["w2"] + params["b2"]
    assert jnp.allclose(out, ref, atol=2e-2, rtol=2e-2), (
        float(jnp.max(jnp.abs(out - ref))))

    print("KERNEL_OK")
</pallas_src>

<mosaic_0001>
module attributes {stable_mosaic.version = 11 : i64} {
  func.func @gcn_layer1_kernel(%arg0: i32, %arg1: memref<16x16xbf16, #tpu.memory_space<vmem>>, %arg2: memref<16x128xbf16, #tpu.memory_space<vmem>>, %arg3: memref<1x128xf32, #tpu.memory_space<vmem>>, %arg4: memref<128x128xbf16, #tpu.memory_space<vmem>>, %arg5: memref<16x128xbf16, #tpu.memory_space<vmem>>) attributes {dimension_semantics = [#tpu.dimension_semantics<parallel>], iteration_bounds = array<i64: 1>, scalar_prefetch = 0 : i64, scratch_operands = 0 : i64, tpu.core_type = #tpu.core_type<tc>, window_params = [{transform_indices = @transform_0, window_bounds = array<i64: 16, 16>}, {pipeline_mode = #tpu.pipeline_mode<synchronous>, transform_indices = @transform_1, window_bounds = array<i64: 16, 128>}, {pipeline_mode = #tpu.pipeline_mode<synchronous>, transform_indices = @transform_2, window_bounds = array<i64: 1, 128>}, {pipeline_mode = #tpu.pipeline_mode<synchronous>, transform_indices = @transform_3, window_bounds = array<i64: 128, 128>}, {transform_indices = @transform_4, window_bounds = array<i64: 16, 128>}]} {
    %c0 = arith.constant 0 : index
    %c0_0 = arith.constant 0 : index
    %0 = vector.load %arg1[%c0, %c0_0] : memref<16x16xbf16, #tpu.memory_space<vmem>>, vector<16x16xbf16>
    %c0_1 = arith.constant 0 : index
    %c0_2 = arith.constant 0 : index
    %1 = vector.load %arg2[%c0_1, %c0_2] : memref<16x128xbf16, #tpu.memory_space<vmem>>, vector<16x128xbf16>
    %cst = arith.constant dense<0.000000e+00> : vector<16x128xf32>
    %2 = tpu.matmul %0, %1, %cst {dimension_numbers = #tpu.dot_dimension_numbers<[1], [0], [0], [1], [0, 0, 1, 1], [], []>} : vector<16x16xbf16>, vector<16x128xbf16>, vector<16x128xf32> -> vector<16x128xf32>
    %c0_3 = arith.constant 0 : index
    %c0_4 = arith.constant 0 : index
    %3 = vector.load %arg3[%c0_3, %c0_4] : memref<1x128xf32, #tpu.memory_space<vmem>>, vector<1x128xf32>
    %4 = vector.broadcast %3 : vector<1x128xf32> to vector<16x128xf32>
    %5 = arith.addf %2, %4 : vector<16x128xf32>
    %cst_5 = arith.constant 0.000000e+00 : f32
    %6 = vector.broadcast %cst_5 : f32 to vector<16x128xf32>
    %7 = arith.maximumf %5, %6 : vector<16x128xf32>
    %8 = arith.truncf %7 : vector<16x128xf32> to vector<16x128xbf16>
    %c0_6 = arith.constant 0 : index
    %c0_7 = arith.constant 0 : index
    %9 = vector.load %arg4[%c0_6, %c0_7] : memref<128x128xbf16, #tpu.memory_space<vmem>>, vector<128x128xbf16>
    %cst_8 = arith.constant dense<0.000000e+00> : vector<16x128xf32>
    %10 = tpu.matmul %8, %9, %cst_8 {dimension_numbers = #tpu.dot_dimension_numbers<[1], [0], [0], [1], [0, 0, 1, 1], [], []>} : vector<16x128xbf16>, vector<128x128xbf16>, vector<16x128xf32> -> vector<16x128xf32>
    %11 = arith.truncf %10 : vector<16x128xf32> to vector<16x128xbf16>
    %c0_9 = arith.constant 0 : index
    %c0_10 = arith.constant 0 : index
    %12 = vector.load %arg5[%c0_9, %c0_10] : memref<16x128xbf16, #tpu.memory_space<vmem>>, vector<16x128xbf16>
    tpu.vector_store %arg5[%c0_9, %c0_10], %11 {strides = array<i32>} : memref<16x128xbf16, #tpu.memory_space<vmem>>, vector<16x128xbf16>,
    return
  }
  func.func @transform_0(%arg0: i32) -> (i32, i32) {
    %c0_i32 = arith.constant 0 : i32
    %c0_i32_0 = arith.constant 0 : i32
    return %arg0, %c0_i32 : i32, i32
  }
  func.func @transform_1(%arg0: i32) -> (i32, i32) {
    %c0_i32 = arith.constant 0 : i32
    %c0_i32_0 = arith.constant 0 : i32
    %c0_i32_1 = arith.constant 0 : i32
    return %c0_i32, %c0_i32_0 : i32, i32
  }
  func.func @transform_2(%arg0: i32) -> (i32, i32) {
    %c0_i32 = arith.constant 0 : i32
    %c0_i32_0 = arith.constant 0 : i32
    %c0_i32_1 = arith.constant 0 : i32
    return %c0_i32, %c0_i32_0 : i32, i32
  }
  func.func @transform_3(%arg0: i32) -> (i32, i32) {
    %c0_i32 = arith.constant 0 : i32
    %c0_i32_0 = arith.constant 0 : i32
    %c0_i32_1 = arith.constant 0 : i32
    return %c0_i32, %c0_i32_0 : i32, i32
  }
  func.func @transform_4(%arg0: i32) -> (i32, i32) {
    %c0_i32 = arith.constant 0 : i32
    %c0_i32_0 = arith.constant 0 : i32
    return %arg0, %c0_i32 : i32, i32
  }
}

</mosaic_0001>

<bundles_post_ra>
// kernel: tpu_custom_call.1
= control target key start
LH: loop header
LB: loop body
LE: loop exit
PB: predicated region body
PF: predicated region fallthrough
CT: control target
= control target key end

     0   :  { %9 = vsyncpa [#allocation3], 0  ;;  %s485_s0 = inlined_call_operand.hbm [shape: bf16[16,16], index: 0, kind: input, shape index: {}]   ;;  %s486_s1 = inlined_call_operand.hbm [shape: bf16[16,128], index: 1, kind: input, shape index: {}]   ;;  %s487_s2 = inlined_call_operand.vmem [shape: f32[1,128], index: 2, kind: input, shape index: {}]   ;;  %s488_s3 = inlined_call_operand.hbm [shape: bf16[128,128], index: 3, kind: input, shape index: {}]   ;;  %s489_s4 = inlined_call_operand.hbm [shape: bf16[16,128], index: 4, kind: output, shape index: {}]  }
   0x1   :  { %10 = vsyncpa [#allocation6], 0 }
   0x2   :  { %11 = vsyncpa [#allocation4], 0  ;;  %s425_s15 = smov [#allocation5]   ;;  %s426_s17 = smov [#allocation2]  }
   0x3   :  { %s29_s16 = sshll.u32 %s425_s15, 4  ;;  %s17_s18 = sshll.u32 %s426_s17, 4  ;;  %s30_s16 = int_to_ptr.vmem [resolvable:$true] %s29_s16  ;;  %s18_s18 = int_to_ptr.vmem [resolvable:$true] %s17_s18 }
   0x4   :  { %s347_s19 = scalar_lea.vmem %s30_s16, 128  ;;  %p352_p1 = scmp.lt.s32.totalorder %s30_s16, %s30_s16 }
   0x5   :  { %p348_p0 = scmp.ne.s32.totalorder %s30_s16, %s347_s19  ;;  %p353_p2 = scmp.lt.s32.totalorder %s347_s19, %s347_s19 }
   0x7   :  { %p354_p3 = por %p353_p2, %p352_p1 }
   0x9   :  { %p355_p4 = pnand %p354_p3, %p348_p0 }
   0xb   :  { %358 = shalt.err (!%p355_p4)
}
   0xc   :  { %s427_s20 = smov 64   ;;  %s428_s21 = smov 4  }
   0xd   :  { %35 = dma.hbm_to_vmem [thread:$0]  %s486_s1, 128, %s30_s16, [#allocation6], %s427_s20, %s427_s20, %s428_s21  }
   0xe   :  { %s367_s24 = scalar_lea.vmem %s18_s18, 128  ;;  %p372_p6 = scmp.lt.s32.totalorder %s18_s18, %s18_s18 }
   0xf   :  { %p368_p5 = scmp.ne.s32.totalorder %s18_s18, %s367_s24  ;;  %p373_p7 = scmp.lt.s32.totalorder %s367_s24, %s367_s24 }
  0x11   :  { %p374_p8 = por %p373_p7, %p372_p6 }
  0x13   :  { %p375_p9 = pnand %p374_p8, %p368_p5 }
  0x15   :  { %378 = shalt.err (!%p375_p9)
}
  0x16   :  { %23 = dma.hbm_to_vmem [thread:$0]  %s485_s0, 128, %s18_s18, [#allocation3], %s427_s20, %s427_s20, %s428_s21  }
  0x17   :  { %s429_s27 = smov [#allocation7]  }
  0x18   :  { %s43_s28 = sshll.u32 %s429_s27, 4  ;;  %s44_s28 = int_to_ptr.vmem [resolvable:$true] %s43_s28 }
  0x19   :  { %s387_s29 = scalar_lea.vmem %s44_s28, 1024  ;;  %p392_p11 = scmp.lt.s32.totalorder %s44_s28, %s44_s28 }
  0x1a   :  { %p388_p10 = scmp.ne.s32.totalorder %s44_s28, %s387_s29  ;;  %p393_p12 = scmp.lt.s32.totalorder %s387_s29, %s387_s29 }
  0x1c   :  { %p394_p13 = por %p393_p12, %p392_p11 }
  0x1e   :  { %p395_p0 = pnand %p394_p13, %p388_p10 }
  0x20   :  { %398 = shalt.err (!%p395_p0)
}
  0x21   :  { %49 = dma.hbm_to_vmem [thread:$0]  %s488_s3, 1024, %s44_s28, [#allocation6], %s427_s20, %s427_s20, %s428_s21  }
  0x22   :  { %419 = dma.done.wait [#allocation3], 128  }
  0x23   :  { %420 = vsyncadd [#allocation3], 4294967168 }
  0x24   :  { %421 = dma.done.wait [#allocation6], 1152  }
  0x25   :  { %422 = vsyncadd [#allocation6], 4294966144  ;;  %v430_v0 = vmov 0.0   ;;  %vm431_vm0 = vmmov 0   ;;  %v329_v1 = vld [vmem:[#allocation5] sm:$0xff]   ;;  %v330_v2 = vld [vmem:[#allocation2] sm:$0xff]  }
  0x26   :  { %295 = vmatprep.subr.bf16.mxu0 %v430_v0  ;;  %297 = vmatprep.mubr.msk.bf16.mxu0 %vm431_vm0, %v430_v0  ;;  %vm82_vm1 = vcmask 130048   ;;  %v331_v3 = vld [vmem:[#allocation7 + $0x38] sm:$0xff]   ;;  %v332_v4 = vld [vmem:[#allocation7 + $0x30] sm:$0xff]   ;;  %v333_v5 = vld [vmem:[#allocation7 + $0x28] sm:$0xff]   ;;  %s432_s5 = smov [#allocation8]  }
  0x27   :  { %301 = vmatprep.subr.bf16.mxu1 %v430_v0  ;;  %317 = vmatprep.mubr.msk.bf16.mxu1 %vm431_vm0, %v430_v0  ;;  %v334_v6 = vld [vmem:[#allocation7 + $0x20] sm:$0xff]   ;;  %v335_v7 = vld [vmem:[#allocation7 + $0x18] sm:$0xff]   ;;  %v336_v8 = vld [vmem:[#allocation7 + $0x10] sm:$0xff]   ;;  %s250_s6 = sshll.u32 %s432_s5, 4  ;;  %s251_s6 = int_to_ptr.vmem [resolvable:$true] %s250_s6 }
  0x28   :  { %296 = vmatpush3.bf16.msra.mxu0 %v329_v1  ;;  %302 = vmatpush3.bf16.msra.mxu1 %v331_v3  ;;  %v337_v9 = vld [vmem:[#allocation7 + $0x8] sm:$0xff]   ;;  %v338_v10 = vld [vmem:[#allocation7] sm:$0xff]   ;;  %v263_v11 = vld [vmem:[%s487_s2] ss:$0 sm:$0xff]  ;;  %s399_s2 = scalar_lea.vmem %s251_s6, 128  ;;  %p404_p2 = scmp.lt.s32.totalorder %s251_s6, %s251_s6 }
  0x29   :  { %303 = vmatprep.subr.bf16.mxu1 %v430_v0  ;;  %p400_p1 = scmp.ne.s32.totalorder %s251_s6, %s399_s2  ;;  %p405_p3 = scmp.lt.s32.totalorder %s399_s2, %s399_s2 }
  0x2b   :  { %298 = vmatmul.mubr.msk.bf16.vlgmr.msra.gmra.mxu0 %vm82_vm1, %v330_v2  ;;  %p406_p4 = por %p405_p3, %p404_p2 }
  0x2c   :  { %304 = vmatpush3.bf16.msra.mxu1 %v332_v4 }
  0x2d   :  { %305 = vmatprep.subr.bf16.mxu1 %v430_v0  ;;  %p407_p5 = pnand %p406_p4, %p400_p1 }
  0x30   :  { %306 = vmatpush3.bf16.msra.mxu1 %v333_v5 }
  0x31   :  { %307 = vmatprep.subr.bf16.mxu1 %v430_v0 }
  0x34   :  { %308 = vmatpush3.bf16.msra.mxu1 %v334_v6 }
  0x35   :  { %309 = vmatprep.subr.bf16.mxu1 %v430_v0 }
  0x38   :  { %310 = vmatpush3.bf16.msra.mxu1 %v335_v7 }
  0x39   :  { %311 = vmatprep.subr.bf16.mxu1 %v430_v0 }
  0x3c   :  { %312 = vmatpush3.bf16.msra.mxu1 %v336_v8 }
  0x3d   :  { %313 = vmatprep.subr.bf16.mxu1 %v430_v0 }
  0x40   :  { %314 = vmatpush3.bf16.msra.mxu1 %v337_v9 }
  0x41   :  { %315 = vmatprep.subr.bf16.mxu1 %v430_v0 }
  0x44   :  { %316 = vmatpush3.bf16.msra.mxu1 %v338_v10 }
  0xeb   :  { %v120_v12 = vpop.f32.mrf.mxu0 }
  0xec   :  { %v121_v14 = vadd.f32 %v263_v11, %v120_v12 }
  0xed   :  { %v299_v13 = vpop.f32.mrf.mxu0 }
  0xee   :  { %v127_v18 = vmax.f32 %v121_v14, 0.0 }
  0xef   :  { %v123_v15 = vpop.f32.mrf.mxu0 }
  0xf0   :  { %v124_v16 = vadd.f32 %v263_v11, %v123_v15 }
  0xf1   :  { %v300_v17 = vpop.f32.mrf.mxu0 }
  0xf2   :  { %v128_v19 = vmax.f32 %v124_v16, 0.0 }
  0xf4   :  { %v129_v20 = vpack.c.bf16 %v128_v19, %v127_v18 }
  0xf6   :  { %318 = vmatmul.mubr.bf16.vlgmr.msra.gmra.mxu1 %v129_v20 }
 0x1b6   :  { %v228_v21 = vpop.f32.mrf.mxu1 }
 0x1b8   :  { %v319_v22 = vpop.f32.mrf.mxu1 }
 0x1ba   :  { %v231_v23 = vpop.f32.mrf.mxu1 }
 0x1bb   :  { %v282_v24 = vpack.c.bf16 %v231_v23, %v228_v21 }
 0x1bc   :  { %v320_v25 = vpop.f32.mrf.mxu1 }
 0x1bd   :  { %283 = vst [vmem:[#allocation8] sm:$0xff] %v282_v24  }
 0x1be   :  { %410 = shalt.err (!%p407_p5)
}
 0x1bf   :  { %256 = dma.vmem_to_hbm [thread:$0]  %s251_s6, 128, %s489_s4, [#allocation4], %s427_s20, %s427_s20, %s428_s21  }
 0x1c0   :  { %423 = dma.done.wait [#allocation4], 128  }
 0x1c1   :  { %424 = vsyncadd [#allocation4], 4294967168 }
 0x1c2   :  { %260 = vsyncpa [#allocation3], 1 }
 0x1c3   :  { %261 = vsyncpa [#allocation6], 1 }
 0x1c4   :  { %262 = vsyncpa [#allocation4], 1 }

</bundles_post_ra>
